<compile_context>
chip_gen: v5e
topology: v5e:2x2
jax: 0.10.0
libtpu: 0.0.40
codegen_flags: <defaults>
</compile_context>

<pallas_src>
import functools

import jax
import jax.numpy as jnp
from jax.experimental import pallas as pl
from jax.experimental.pallas import tpu as pltpu


def _round_up(x: int, m: int) -> int:
    return ((x + m - 1) // m) * m


def gmf_kernel(ue_ref, ie_ref, w_ref, b_ref, o_ref, *, dim: int, pack: int):
    """One batch tile of the GMF forward pass.

    ue_ref / ie_ref: (TBr, L) packed gathered-embedding tiles; each row holds
        `pack` consecutive batch elements x `dim` features (L = pack*dim is a
        multiple of 128 -> fully lane-dense loads).
    w_ref: (1, L) affine weight, tiled `pack` times along lanes (grid-resident).
    b_ref: (1, 1) bias scalar in SMEM.
    o_ref: (pack, TBr) lane-dense output block; o[g, i] = y[pack*i + g].
    """
    # GMF core + affine weight as one fused elementwise expression (VPU).
    prod = ue_ref[...] * ie_ref[...] * w_ref[...]              # (TBr, L)
    # Single full-tile transpose (XLU, hidden under the HBM DMA) so the
    # per-example reduction becomes a cheap cross-sublane sum and the output
    # block stays lane-dense (no masked narrow stores).
    pt = prod.T                                                # (L, TBr)
    parts = [
        jnp.sum(pt[g * dim:(g + 1) * dim, :], axis=0, keepdims=True)
        for g in range(pack)
    ]
    col = parts[0] if pack == 1 else jnp.concatenate(parts, axis=0)
    o_ref[...] = col + b_ref[0, 0]


def gmf_forward(users, items, user_emb, item_emb, weight, bias, *, tile_b=8192):
    """users/items: int [B]; user_emb: [U, D]; item_emb: [I, D];
    weight: the nn.Linear(D, 1) weight (shape (1,D), (D,) or (D,1));
    bias: the Linear bias (scalar / (1,) / (1,1)).  Returns float32 [B, 1]."""
    B = int(users.shape[0])
    D = int(user_emb.shape[1])

    # Pack `pack` batch rows per 128-lane vector row.
    if D <= 128:
        if 128 % D != 0:
            # TODO(synk): pad the feature dim to the next divisor of 128.
            raise NotImplementedError("embedding_dim must divide 128")
        pack = 128 // D
    else:
        if D % 128 != 0:
            raise NotImplementedError("embedding_dim must be a multiple of 128")
        pack = 1
    lanes = pack * D            # >= 128, multiple of 128
    unit = 128 * pack           # batch granularity keeping every block
                                # (mult-of-128 sublanes, mult-of-128 lanes)

    # --- batch tile sizing --------------------------------------------------
    tile_cap = max(unit, (tile_b // unit) * unit)
    b_min = _round_up(B, unit)                # clamp: tiny batches stay tiny
    if b_min <= tile_cap:
        if b_min >= 2 * unit and b_min >= 1024:
            # Split into >= 2 grid steps so both v7x TensorCores get work.
            tb = max(unit, ((b_min // 2) // unit) * unit)
        else:
            tb = b_min
    else:
        tb = tile_cap
    b_pad = ((B + tb - 1) // tb) * tb
    tbr = tb // pack

    # --- gather (full-bandwidth XLA row gather, no transpose round trip) ----
    pad = b_pad - B
    users_p = jnp.pad(users.astype(jnp.int32), (0, pad))
    items_p = jnp.pad(items.astype(jnp.int32), (0, pad))
    ue = user_emb[users_p].astype(jnp.float32).reshape(b_pad // pack, lanes)
    ie = item_emb[items_p].astype(jnp.float32).reshape(b_pad // pack, lanes)
    w_row = jnp.tile(jnp.asarray(weight, jnp.float32).reshape(1, D), (1, pack))
    b_sc = jnp.asarray(bias, jnp.float32).reshape(1, 1)

    kernel = functools.partial(gmf_kernel, dim=D, pack=pack)
    # 2 inputs x 2 pipeline buffers (+ output buffers / weight row) + headroom.
    vmem_need = 6 * tbr * lanes * 4
    out = pl.pallas_call(
        kernel,
        out_shape=jax.ShapeDtypeStruct((pack, b_pad // pack), jnp.float32),
        grid=(b_pad // tb,),
        in_specs=[
            pl.BlockSpec((tbr, lanes), lambda t: (t, 0)),     # packed user emb
            pl.BlockSpec((tbr, lanes), lambda t: (t, 0)),     # packed item emb
            pl.BlockSpec((1, lanes), lambda t: (0, 0)),       # resident weight
            pl.BlockSpec(memory_space=pltpu.MemorySpace.SMEM),  # bias scalar
        ],
        out_specs=pl.BlockSpec((pack, tbr), lambda t: (0, t)),
        compiler_params=pltpu.CompilerParams(
            dimension_semantics=("parallel",),
            vmem_limit_bytes=min(48 * 1024 * 1024,
                                 max(16 * 1024 * 1024, vmem_need)),
        ),
    )(ue, ie, w_row, b_sc)

    # out[g, i] = y[pack*i + g]; un-permute (tiny: ~B*4 bytes of data).
    return out.T.reshape(-1)[:B].reshape(B, 1)


if __name__ == "__main__":
    num_users = 10
    num_items = 12
    embedding_dim = 32
    batch = 8

    key = jax.random.PRNGKey(0)
    k_ue, k_ie, k_w, k_b, k_u, k_i = jax.random.split(key, 6)

    # nn.Embedding weights with .uniform_(0.5, 1.0)
    user_emb = jax.random.uniform(k_ue, (num_users, embedding_dim),
                                  dtype=jnp.float32, minval=0.5, maxval=1.0)
    item_emb = jax.random.uniform(k_ie, (num_items, embedding_dim),
                                  dtype=jnp.float32, minval=0.5, maxval=1.0)

    # nn.Linear(embedding_dim, 1): weight (1, D), bias (1,), U(-1/sqrt(D), 1/sqrt(D))
    bound = 1.0 / (embedding_dim ** 0.5)
    weight = jax.random.uniform(k_w, (1, embedding_dim),
                                dtype=jnp.float32, minval=-bound, maxval=bound)
    bias = jax.random.uniform(k_b, (1,),
                              dtype=jnp.float32, minval=-bound, maxval=bound)

    users = jax.random.randint(k_u, (batch,), 0, num_users, dtype=jnp.int32)
    items = jax.random.randint(k_i, (batch,), 0, num_items, dtype=jnp.int32)

    gmf_jit = jax.jit(functools.partial(gmf_forward, tile_b=8192))
    out = gmf_jit(users, items, user_emb, item_emb, weight, bias)
    out = jax.block_until_ready(out)

    # Pure-JAX reference (same semantics as the PyTorch forward).
    ref = (user_emb[users] * item_emb[items]) @ weight.T + bias
    assert out.shape == (batch, 1)
    assert jnp.allclose(out, ref, atol=1e-5, rtol=1e-5)

    print("KERNEL_OK")
</pallas_src>

<mosaic_0001>
module attributes {stable_mosaic.version = 11 : i64} {
  func.func @gmf_kernel(%arg0: i32, %arg1: memref<128x128xf32, #tpu.memory_space<vmem>>, %arg2: memref<128x128xf32, #tpu.memory_space<vmem>>, %arg3: memref<1x128xf32, #tpu.memory_space<vmem>>, %arg4: memref<1x1xf32, #tpu.memory_space<smem>>, %arg5: memref<4x128xf32, #tpu.memory_space<vmem>>) attributes {dimension_semantics = [#tpu.dimension_semantics<parallel>], iteration_bounds = array<i64: 1>, scalar_prefetch = 0 : i64, scratch_operands = 0 : i64, tpu.core_type = #tpu.core_type<tc>, window_params = [{transform_indices = @transform_0, window_bounds = array<i64: 128, 128>}, {transform_indices = @transform_1, window_bounds = array<i64: 128, 128>}, {pipeline_mode = #tpu.pipeline_mode<synchronous>, transform_indices = @transform_2, window_bounds = array<i64: 1, 128>}, {transform_indices = @transform_3, window_bounds = array<i64: 1, 1>}, {transform_indices = @transform_4, window_bounds = array<i64: 4, 128>}]} {
    %c0 = arith.constant 0 : index
    %c0_0 = arith.constant 0 : index
    %0 = vector.load %arg1[%c0, %c0_0] : memref<128x128xf32, #tpu.memory_space<vmem>>, vector<128x128xf32>
    %c0_1 = arith.constant 0 : index
    %c0_2 = arith.constant 0 : index
    %1 = vector.load %arg2[%c0_1, %c0_2] : memref<128x128xf32, #tpu.memory_space<vmem>>, vector<128x128xf32>
    %2 = arith.mulf %0, %1 : vector<128x128xf32>
    %c0_3 = arith.constant 0 : index
    %c0_4 = arith.constant 0 : index
    %3 = vector.load %arg3[%c0_3, %c0_4] : memref<1x128xf32, #tpu.memory_space<vmem>>, vector<1x128xf32>
    %4 = vector.broadcast %3 : vector<1x128xf32> to vector<128x128xf32>
    %5 = arith.mulf %2, %4 : vector<128x128xf32>
    %6 = tpu.transpose %5, [1, 0] : vector<128x128xf32> -> vector<128x128xf32>
    %7 = vector.extract_strided_slice %6 {offsets = [0, 0], sizes = [32, 128], strides = [1, 1]} : vector<128x128xf32> to vector<32x128xf32>
    %cst = arith.constant dense<0.000000e+00> : vector<128xf32>
    %8 = vector.multi_reduction <add>, %7, %cst [0] : vector<32x128xf32> to vector<128xf32>
    %9 = vector.shape_cast %8 : vector<128xf32> to vector<1x128xf32>
    %10 = vector.extract_strided_slice %6 {offsets = [32, 0], sizes = [32, 128], strides = [1, 1]} : vector<128x128xf32> to vector<32x128xf32>
    %cst_5 = arith.constant dense<0.000000e+00> : vector<128xf32>
    %11 = vector.multi_reduction <add>, %10, %cst_5 [0] : vector<32x128xf32> to vector<128xf32>
    %12 = vector.shape_cast %11 : vector<128xf32> to vector<1x128xf32>
    %13 = vector.extract_strided_slice %6 {offsets = [64, 0], sizes = [32, 128], strides = [1, 1]} : vector<128x128xf32> to vector<32x128xf32>
    %cst_6 = arith.constant dense<0.000000e+00> : vector<128xf32>
    %14 = vector.multi_reduction <add>, %13, %cst_6 [0] : vector<32x128xf32> to vector<128xf32>
    %15 = vector.shape_cast %14 : vector<128xf32> to vector<1x128xf32>
    %16 = vector.extract_strided_slice %6 {offsets = [96, 0], sizes = [32, 128], strides = [1, 1]} : vector<128x128xf32> to vector<32x128xf32>
    %cst_7 = arith.constant dense<0.000000e+00> : vector<128xf32>
    %17 = vector.multi_reduction <add>, %16, %cst_7 [0] : vector<32x128xf32> to vector<128xf32>
    %18 = vector.shape_cast %17 : vector<128xf32> to vector<1x128xf32>
    %19 = tpu.concatenate %9, %12, %15, %18 in 0 : vector<1x128xf32>, vector<1x128xf32>, vector<1x128xf32>, vector<1x128xf32> -> vector<4x128xf32>
    %c0_8 = arith.constant 0 : index
    %c0_9 = arith.constant 0 : index
    %20 = memref.load %arg4[%c0_8, %c0_9] : memref<1x1xf32, #tpu.memory_space<smem>>
    %21 = vector.broadcast %20 : f32 to vector<4x128xf32>
    %22 = arith.addf %19, %21 : vector<4x128xf32>
    %c0_10 = arith.constant 0 : index
    %c0_11 = arith.constant 0 : index
    %23 = vector.load %arg5[%c0_10, %c0_11] : memref<4x128xf32, #tpu.memory_space<vmem>>, vector<4x128xf32>
    tpu.vector_store %arg5[%c0_10, %c0_11], %22 {strides = array<i32>} : memref<4x128xf32, #tpu.memory_space<vmem>>, vector<4x128xf32>,
    return
  }
  func.func @transform_0(%arg0: i32) -> (i32, i32) {
    %c0_i32 = arith.constant 0 : i32
    %c0_i32_0 = arith.constant 0 : i32
    return %arg0, %c0_i32 : i32, i32
  }
  func.func @transform_1(%arg0: i32) -> (i32, i32) {
    %c0_i32 = arith.constant 0 : i32
    %c0_i32_0 = arith.constant 0 : i32
    return %arg0, %c0_i32 : i32, i32
  }
  func.func @transform_2(%arg0: i32) -> (i32, i32) {
    %c0_i32 = arith.constant 0 : i32
    %c0_i32_0 = arith.constant 0 : i32
    %c0_i32_1 = arith.constant 0 : i32
    return %c0_i32, %c0_i32_0 : i32, i32
  }
  func.func @transform_3(%arg0: i32) -> (i32, i32) {
    %c0_i32 = arith.constant 0 : i32
    %c0_i32_0 = arith.constant 0 : i32
    %c0_i32_1 = arith.constant 0 : i32
    return %c0_i32, %c0_i32_0 : i32, i32
  }
  func.func @transform_4(%arg0: i32) -> (i32, i32) {
    %c0_i32 = arith.constant 0 : i32
    %c0_i32_0 = arith.constant 0 : i32
    return %c0_i32, %arg0 : i32, i32
  }
}

</mosaic_0001>

<bundles_post_ra>
// kernel: gmf_forward.1
= control target key start
LH: loop header
LB: loop body
LE: loop exit
PB: predicated region body
PF: predicated region fallthrough
CT: control target
= control target key end

     0   :  { %vm154_vm0 = vcmask 1040384   ;;  %vm156_vm1 = vcmask 1041408   ;;  %vm158_vm2 = vcmask 1042432   ;;  %s317_s0 = inlined_call_operand.vmem [shape: f32[128,128], index: 0, kind: input, shape index: {}]   ;;  %s318_s1 = inlined_call_operand.vmem [shape: f32[128,128], index: 1, kind: input, shape index: {}]   ;;  %s319_s2 = inlined_call_operand.vmem [shape: f32[1,128], index: 2, kind: input, shape index: {}]   ;;  %s320_s3 = inlined_call_operand.<no memory space> [shape: f32[1,1], index: 3, kind: input, shape index: {}]   ;;  %s321_s4 = inlined_call_operand.vmem [shape: f32[4,128], index: 4, kind: output, shape index: {}]  }
   0x1   :  { %v18_v0 = vld [vmem:[%s317_s0] sm:$0xff]  ;;  %v19_v4 = vld [vmem:[%s317_s0 + $0x8] sm:$0xff]  ;;  %v20_v9 = vld [vmem:[%s317_s0 + $0x10] sm:$0xff] }
   0x2   :  { %v34_v1 = vld [vmem:[%s318_s1] sm:$0xff]  ;;  %v35_v5 = vld [vmem:[%s318_s1 + $0x8] sm:$0xff]  ;;  %v36_v10 = vld [vmem:[%s318_s1 + $0x10] sm:$0xff] }
   0x3   :  { %v50_v2 = vmul.f32 %v34_v1, %v18_v0  ;;  %v203_v3 = vld [vmem:[%s319_s2] ss:$0 sm:$0xff]  ;;  %v51_v7 = vmul.f32 %v35_v5, %v19_v4  ;;  %v52_v11 = vmul.f32 %v36_v10, %v20_v9  ;;  %v21_v13 = vld [vmem:[%s317_s0 + $0x18] sm:$0xff]  ;;  %v23_v21 = vld [vmem:[%s317_s0 + $0x28] sm:$0xff] }
   0x4   :  { %v37_v14 = vld [vmem:[%s318_s1 + $0x18] sm:$0xff]  ;;  %v22_v17 = vld [vmem:[%s317_s0 + $0x20] sm:$0xff]  ;;  %v39_v22 = vld [vmem:[%s318_s1 + $0x28] sm:$0xff] }
   0x5   :  { %v70_v6 = vmul.f32 %v203_v3, %v50_v2  ;;  %v71_v8 = vmul.f32 %v203_v3, %v51_v7  ;;  %v72_v12 = vmul.f32 %v203_v3, %v52_v11  ;;  %v53_v15 = vmul.f32 %v37_v14, %v21_v13  ;;  %v38_v18 = vld [vmem:[%s318_s1 + $0x20] sm:$0xff]  ;;  %v24_v25 = vld [vmem:[%s317_s0 + $0x30] sm:$0xff]  ;;  %v25_v29 = vld [vmem:[%s317_s0 + $0x38] sm:$0xff] }
   0x6   :  { %v54_v19 = vmul.f32 %v38_v18, %v22_v17  ;;  %v55_v23 = vmul.f32 %v39_v22, %v23_v21  ;;  %v40_v26 = vld [vmem:[%s318_s1 + $0x30] sm:$0xff]  ;;  %v41_v30 = vld [vmem:[%s318_s1 + $0x38] sm:$0xff]  ;;  %v26_v33 = vld [vmem:[%s317_s0 + $0x40] sm:$0xff] }
   0x7   :  { %86 = vxpose.xlu0.b32.start [1/16] %v70_v6, 128  ;;  %v73_v16 = vmul.f32 %v203_v3, %v53_v15  ;;  %v56_v27 = vmul.f32 %v40_v26, %v24_v25  ;;  %v57_v31 = vmul.f32 %v41_v30, %v25_v29  ;;  %v42_v34 = vld [vmem:[%s318_s1 + $0x40] sm:$0xff]  ;;  %v27_v37 = vld [vmem:[%s317_s0 + $0x48] sm:$0xff]  ;;  %v28_v41 = vld [vmem:[%s317_s0 + $0x50] sm:$0xff] }
   0x8   :  { %v74_v20 = vmul.f32 %v203_v3, %v54_v19  ;;  %v75_v24 = vmul.f32 %v203_v3, %v55_v23  ;;  %v58_v35 = vmul.f32 %v42_v34, %v26_v33  ;;  %v43_v38 = vld [vmem:[%s318_s1 + $0x48] sm:$0xff]  ;;  %v44_v42 = vld [vmem:[%s318_s1 + $0x50] sm:$0xff]  ;;  %v29_v45 = vld [vmem:[%s317_s0 + $0x58] sm:$0xff] }
   0x9   :  { %v76_v28 = vmul.f32 %v203_v3, %v56_v27  ;;  %v77_v32 = vmul.f32 %v203_v3, %v57_v31  ;;  %v59_v39 = vmul.f32 %v43_v38, %v27_v37  ;;  %v60_v43 = vmul.f32 %v44_v42, %v28_v41  ;;  %v45_v46 = vld [vmem:[%s318_s1 + $0x58] sm:$0xff]  ;;  %v30_v49 = vld [vmem:[%s317_s0 + $0x60] sm:$0xff]  ;;  %v31_v53 = vld [vmem:[%s317_s0 + $0x68] sm:$0xff] }
   0xa   :  { %v78_v36 = vmul.f32 %v203_v3, %v58_v35  ;;  %v61_v47 = vmul.f32 %v45_v46, %v29_v45  ;;  %v46_v50 = vld [vmem:[%s318_s1 + $0x60] sm:$0xff]  ;;  %v47_v54 = vld [vmem:[%s318_s1 + $0x68] sm:$0xff]  ;;  %v32_v57 = vld [vmem:[%s317_s0 + $0x70] sm:$0xff] }
   0xb   :  { %v79_v40 = vmul.f32 %v203_v3, %v59_v39  ;;  %v80_v44 = vmul.f32 %v203_v3, %v60_v43  ;;  %v62_v51 = vmul.f32 %v46_v50, %v30_v49  ;;  %v63_v55 = vmul.f32 %v47_v54, %v31_v53  ;;  %v48_v58 = vld [vmem:[%s318_s1 + $0x70] sm:$0xff]  ;;  %v33_v61 = vld [vmem:[%s317_s0 + $0x78] sm:$0xff] }
   0xc   :  { %v81_v48 = vmul.f32 %v203_v3, %v61_v47  ;;  %v64_v59 = vmul.f32 %v48_v58, %v32_v57  ;;  %v49_v62 = vld [vmem:[%s318_s1 + $0x78] sm:$0xff]  ;;  %v161_v54 = vstv %s320_s3 }
   0xd   :  { %v82_v52 = vmul.f32 %v203_v3, %v62_v51  ;;  %v83_v56 = vmul.f32 %v203_v3, %v63_v55  ;;  %v65_v63 = vmul.f32 %v49_v62, %v33_v61 }
   0xe   :  { %v84_v60 = vmul.f32 %v203_v3, %v64_v59 }
   0xf   :  { %87 = vxpose.xlu0.b32.cont [2/16] %v71_v8, 128  ;;  %v85_v0 = vmul.f32 %v203_v3, %v65_v63 }
  0x17   :  { %88 = vxpose.xlu0.b32.cont [3/16] %v72_v12, 128 }
  0x1f   :  { %89 = vxpose.xlu0.b32.cont [4/16] %v73_v16, 128 }
  0x27   :  { %90 = vxpose.xlu0.b32.cont [5/16] %v74_v20, 128 }
  0x2f   :  { %91 = vxpose.xlu0.b32.cont [6/16] %v75_v24, 128 }
  0x37   :  { %92 = vxpose.xlu0.b32.cont [7/16] %v76_v28, 128 }
  0x3f   :  { %93 = vxpose.xlu0.b32.cont [8/16] %v77_v32, 128 }
  0x47   :  { %94 = vxpose.xlu0.b32.cont [9/16] %v78_v36, 128 }
  0x4f   :  { %95 = vxpose.xlu0.b32.cont [10/16] %v79_v40, 128 }
  0x57   :  { %96 = vxpose.xlu0.b32.cont [11/16] %v80_v44, 128 }
  0x5f   :  { %97 = vxpose.xlu0.b32.cont [12/16] %v81_v48, 128 }
  0x67   :  { %98 = vxpose.xlu0.b32.cont [13/16] %v82_v52, 128 }
  0x6f   :  { %99 = vxpose.xlu0.b32.cont [14/16] %v83_v56, 128 }
  0x77   :  { %100 = vxpose.xlu0.b32.cont [15/16] %v84_v60, 128 }
  0x7f   :  { %101 = vxpose.xlu0.b32.end [16/16] %v85_v0, 128 }
  0xab   :  { %v102_v1 = vpop.trf.xlu0 }
  0xb3   :  { %v103_v2 = vpop.trf.xlu0 }
  0xb4   :  { %v118_v4 = vadd.f32 %v103_v2, %v102_v1 }
  0xbb   :  { %v104_v5 = vpop.trf.xlu0 }
  0xbc   :  { %v119_v6 = vadd.f32 %v118_v4, %v104_v5 }
  0xc3   :  { %v105_v7 = vpop.trf.xlu0 }
  0xc4   :  { %v120_v8 = vadd.f32 %v119_v6, %v105_v7 }
  0xc6   :  { %v121_v13 = vrot.slane %v120_v8, 4 }
  0xc8   :  { %v122_v15 = vadd.f32 %v121_v13, %v120_v8 }
  0xca   :  { %v123_v17 = vrot.slane %v122_v15, 2 }
  0xcb   :  { %v106_v9 = vpop.trf.xlu0 }
  0xcc   :  { %v124_v3 = vadd.f32 %v123_v17, %v122_v15 }
  0xce   :  { %v125_v23 = vrot.slane %v124_v3, 1 }
  0xd0   :  { %v126_v26 = vadd.f32 %v125_v23, %v124_v3 }
  0xd3   :  { %v107_v10 = vpop.trf.xlu0 }
  0xd4   :  { %v127_v11 = vadd.f32 %v107_v10, %v106_v9 }
  0xdb   :  { %v108_v12 = vpop.trf.xlu0 }
  0xdc   :  { %v128_v14 = vadd.f32 %v127_v11, %v108_v12 }
  0xe3   :  { %v109_v16 = vpop.trf.xlu0 }
  0xe4   :  { %v129_v18 = vadd.f32 %v128_v14, %v109_v16 }
  0xe6   :  { %v130_v19 = vrot.slane %v129_v18, 4 }
  0xe8   :  { %v131_v20 = vadd.f32 %v130_v19, %v129_v18 }
  0xea   :  { %v132_v21 = vrot.slane %v131_v20, 2 }
  0xeb   :  { %v110_v22 = vpop.trf.xlu0 }
  0xec   :  { %v133_v24 = vadd.f32 %v132_v21, %v131_v20 }
  0xee   :  { %v134_v25 = vrot.slane %v133_v24, 1 }
  0xf0   :  { %v135_v27 = vadd.f32 %v134_v25, %v133_v24 }
  0xf2   :  { %v155_v28 = vsel %vm154_vm0, %v126_v26, %v135_v27 }
  0xf3   :  { %v111_v29 = vpop.trf.xlu0 }
  0xf4   :  { %v136_v33 = vadd.f32 %v111_v29, %v110_v22 }
  0xfb   :  { %v112_v30 = vpop.trf.xlu0 }
  0xfc   :  { %v137_v34 = vadd.f32 %v136_v33, %v112_v30 }
 0x103   :  { %v113_v31 = vpop.trf.xlu0 }
 0x104   :  { %v138_v36 = vadd.f32 %v137_v34, %v113_v31 }
 0x106   :  { %v139_v37 = vrot.slane %v138_v36, 4 }
 0x108   :  { %v140_v39 = vadd.f32 %v139_v37, %v138_v36 }
 0x10a   :  { %v141_v41 = vrot.slane %v140_v39, 2 }
 0x10b   :  { %v114_v32 = vpop.trf.xlu0 }
 0x10c   :  { %v142_v45 = vadd.f32 %v141_v41, %v140_v39 }
 0x10e   :  { %v143_v48 = vrot.slane %v142_v45, 1 }
 0x110   :  { %v144_v51 = vadd.f32 %v143_v48, %v142_v45 }
 0x112   :  { %v157_v55 = vsel %vm156_vm1, %v155_v28, %v144_v51 }
 0x113   :  { %v115_v35 = vpop.trf.xlu0 }
 0x114   :  { %v145_v40 = vadd.f32 %v115_v35, %v114_v32 }
 0x11b   :  { %v116_v38 = vpop.trf.xlu0 }
 0x11c   :  { %v146_v42 = vadd.f32 %v145_v40, %v116_v38 }
 0x123   :  { %v117_v43 = vpop.trf.xlu0 }
 0x124   :  { %v147_v44 = vadd.f32 %v146_v42, %v117_v43 }
 0x126   :  { %v148_v46 = vrot.slane %v147_v44, 4 }
 0x128   :  { %v149_v47 = vadd.f32 %v148_v46, %v147_v44 }
 0x12a   :  { %v150_v49 = vrot.slane %v149_v47, 2 }
 0x12c   :  { %v151_v50 = vadd.f32 %v150_v49, %v149_v47 }
 0x12e   :  { %v152_v52 = vrot.slane %v151_v50, 1 }
 0x130   :  { %v153_v53 = vadd.f32 %v152_v52, %v151_v50 }
 0x132   :  { %v159_v56 = vsel %vm158_vm2, %v157_v55, %v153_v53 }
 0x133   :  { %v162_v57 = vadd.f32 %v161_v54, %v159_v56 }
 0x135   :  { %163 = vst [vmem:[%s321_s4] sm:$0xf] %v162_v57 }

</bundles_post_ra>
